<compile_context>
chip_gen: v5e
topology: v5e:2x2
jax: 0.10.0
libtpu: 0.0.40
codegen_flags: <defaults>
</compile_context>

<pallas_src>
import functools

import jax
import jax.numpy as jnp
from jax.experimental import pallas as pl
from jax.experimental.pallas import tpu as pltpu


# -----------------------------------------------------------------------------
# Tiling helpers
# -----------------------------------------------------------------------------
def _lane_tile(n, cap=8192):
    """Lane (last-dim) tile: full dim if it fits, else a dense multiple of 128."""
    if n <= cap:
        return n
    return (cap // 128) * 128


def _row_tile(rows, max_rows=64):
    """Sublane (second-minor) tile: full dim if <= 8, else a multiple of 8."""
    if rows <= 8:
        return rows
    return 8 * min(max_rows // 8, rows // 8)


# -----------------------------------------------------------------------------
# Kernel 1: undo_norm   ->  (x * std + mean) * 2 - 1  folded to  x*scale + shift
# -----------------------------------------------------------------------------
def _undo_norm_kernel(scale_ref, shift_ref, x_ref, o_ref):
    # scale/shift: (rt, 1) broadcast across lanes; single fused multiply-add.
    o_ref[...] = (x_ref[...] * scale_ref[...] + shift_ref[...]).astype(o_ref.dtype)


def undo_norm(x, input_mean, input_std):
    """x: (B, C, H, W); input_mean/std: (C,).  Returns (x*std + mean)*2 - 1."""
    B, C, H, W = x.shape
    rows, hw = B * C, H * W
    x2 = x.reshape(rows, hw)                                  # free reshape on NCHW

    # Tiny per-row folded affine tables (channel = row % C).
    scale = jnp.tile(input_std.astype(jnp.float32) * 2.0, B).reshape(rows, 1)
    shift = jnp.tile(input_mean.astype(jnp.float32) * 2.0 - 1.0, B).reshape(rows, 1)

    rt = _row_tile(rows)
    lt = _lane_tile(hw)

    out = pl.pallas_call(
        _undo_norm_kernel,
        out_shape=jax.ShapeDtypeStruct((rows, hw), x.dtype),
        grid=(pl.cdiv(rows, rt), pl.cdiv(hw, lt)),
        in_specs=[
            pl.BlockSpec((rt, 1), lambda i, j: (i, 0)),       # scale
            pl.BlockSpec((rt, 1), lambda i, j: (i, 0)),       # shift
            pl.BlockSpec((rt, lt), lambda i, j: (i, j)),      # x
        ],
        out_specs=pl.BlockSpec((rt, lt), lambda i, j: (i, j)),
        compiler_params=pltpu.CompilerParams(
            dimension_semantics=("parallel", "parallel")),
    )(scale, shift, x2)

    return out.reshape(B, C, H, W)


# -----------------------------------------------------------------------------
# Kernel 2: Gaussian sample statistics (mean over S, unbiased variance over S)
#   Single pass: sum(x), sum(x*x) in f32; var = (sum_sq - sum*mean) / (S - 1).
# -----------------------------------------------------------------------------
def _gaussian_stats_kernel(s_ref, mean_ref, var_ref, *, inv_s, inv_sm1):
    x = s_ref[...].astype(jnp.float32)                        # (1, S, lt), f32 acc
    ssum = jnp.sum(x, axis=1, keepdims=True)
    ssq = jnp.sum(x * x, axis=1, keepdims=True)
    m = ssum * inv_s
    var = (ssq - ssum * m) * inv_sm1                          # == sum((x-m)^2)/(S-1)
    mean_ref[...] = m.astype(mean_ref.dtype)
    var_ref[...] = var.astype(var_ref.dtype)


def sample_statistics_gaussian(samples):
    """samples: (B, S, C, H, W) or (S, C, H, W) -> (mean (B,C,H,W), var (B,C,H,W))."""
    if samples.ndim == 4:
        samples = samples[None]
    B, S, C, H, W = samples.shape
    chw = C * H * W
    s3 = samples.reshape(B, S, chw)                           # free reshape, no transpose

    lt = _lane_tile(chw)
    # Same semantics as the PyTorch code (S == 1 -> inf, as torch division by 0 would).
    inv_sm1 = (1.0 / (S - 1)) if S > 1 else float("inf")
    kern = functools.partial(_gaussian_stats_kernel, inv_s=1.0 / S, inv_sm1=inv_sm1)

    mean_o, var_o = pl.pallas_call(
        kern,
        out_shape=(
            jax.ShapeDtypeStruct((B, 1, chw), samples.dtype),
            jax.ShapeDtypeStruct((B, 1, chw), samples.dtype),
        ),
        grid=(B, pl.cdiv(chw, lt)),
        in_specs=[pl.BlockSpec((1, S, lt), lambda b, j: (b, 0, j))],
        out_specs=[
            pl.BlockSpec((1, 1, lt), lambda b, j: (b, 0, j)),
            pl.BlockSpec((1, 1, lt), lambda b, j: (b, 0, j)),
        ],
        compiler_params=pltpu.CompilerParams(
            dimension_semantics=("parallel", "parallel")),
    )(s3)

    return mean_o.reshape(B, C, H, W), var_o.reshape(B, C, H, W)


# -----------------------------------------------------------------------------
# Kernel 3: synthetic net_g — 1x1 conv producing (mean, log_var).
#   Lane-dense VPU channel mix on the native (B, C, HW) layout; w/b in SMEM.
# -----------------------------------------------------------------------------
def _channel_mix_kernel(w_ref, b_ref, x_ref, o_ref, *, c_in, n_out):
    x = x_ref[...].astype(jnp.float32)                        # (1, c_in, lt)
    outs = []
    for n in range(n_out):                                    # tiny static unroll
        acc = x[:, 0:1, :] * w_ref[n] + b_ref[n]
        for c in range(1, c_in):
            acc = acc + x[:, c:c + 1, :] * w_ref[c * n_out + n]
        outs.append(acc)
    o_ref[...] = jnp.concatenate(outs, axis=1).astype(o_ref.dtype)


def net_g_apply(x, w, b, c_out):
    """x: (B, C, H, W); w: (C, 2*c_out); b: (2*c_out,).  Returns (mean, log_var)."""
    B, C, H, W = x.shape
    n_out = 2 * c_out
    hw = H * W
    x3 = x.reshape(B, C, hw)                                  # free reshape, no NHWC transpose
    lt = _lane_tile(hw)

    kern = functools.partial(_channel_mix_kernel, c_in=C, n_out=n_out)
    y = pl.pallas_call(
        kern,
        out_shape=jax.ShapeDtypeStruct((B, n_out, hw), x.dtype),
        grid=(B, pl.cdiv(hw, lt)),
        in_specs=[
            pl.BlockSpec(memory_space=pltpu.MemorySpace.SMEM),   # w flat (C*n_out,)
            pl.BlockSpec(memory_space=pltpu.MemorySpace.SMEM),   # b (n_out,)
            pl.BlockSpec((1, C, lt), lambda bi, j: (bi, 0, j)),
        ],
        out_specs=pl.BlockSpec((1, n_out, lt), lambda bi, j: (bi, 0, j)),
        compiler_params=pltpu.CompilerParams(
            dimension_semantics=("parallel", "parallel")),
    )(w.reshape(-1).astype(jnp.float32), b.astype(jnp.float32), x3)

    y = y.reshape(B, n_out, H, W)
    return y[:, :c_out], y[:, c_out:]


# -----------------------------------------------------------------------------
# BaseModel equivalent (forward dispatch + module-owned tensor math)
# -----------------------------------------------------------------------------
MODE_BASE, MODE_PRED, MODE_MR = "base", "pred", "mr"


class BaseModelPallas:
    def __init__(self, mode, net_g, net_p=None, input_mean=None, input_std=None):
        assert mode in (MODE_BASE, MODE_PRED, MODE_MR)
        self.mode = mode
        self.net_g = net_g
        self.net_p = net_p
        self.input_mean = input_mean   # (3,) or None
        self.input_std = input_std     # (3,) or None

    def forward(self, x):
        if self.mode == MODE_PRED:
            return self.net_p(x)[0]
        elif self.mode == MODE_MR:
            return self.net_g(x)[0]
        else:
            return self.net_g(x)[0]

    def undo_norm(self, x):
        if self.input_mean is None:
            return x
        return undo_norm(x, self.input_mean, self.input_std)

    def sample_statistics(self, samples):
        # Gaussian MLE branch (config.model.mle.type == 'gaussian')
        # TODO(synk): Laplace branch (median / mean-abs-dev) not implemented.
        return sample_statistics_gaussian(samples)


if __name__ == "__main__":
    key = jax.random.PRNGKey(0)
    k_x, k_w, k_b, k_s = jax.random.split(key, 4)

    B, C, H, W = 2, 3, 16, 16
    S = 8          # number of MR samples
    C_OUT = 3

    x = jax.random.normal(k_x, (B, C, H, W), dtype=jnp.float32)
    samples = jax.random.normal(k_s, (B, S, C, H, W), dtype=jnp.float32)

    # Deterministic synthetic net_g parameters (1x1 conv -> mean & log_var heads)
    w = jax.random.normal(k_w, (C, 2 * C_OUT), dtype=jnp.float32) * (1.0 / float(C) ** 0.5)
    b = jax.random.normal(k_b, (2 * C_OUT,), dtype=jnp.float32) * 0.01

    input_mean = jnp.array([0.485, 0.456, 0.406], dtype=jnp.float32)
    input_std = jnp.array([0.229, 0.224, 0.225], dtype=jnp.float32)

    model = BaseModelPallas(
        mode=MODE_BASE,
        net_g=lambda inp: net_g_apply(inp, w, b, C_OUT),
        input_mean=input_mean,
        input_std=input_std,
    )

    # forward:  net_g(x)[0]
    y = jax.block_until_ready(model.forward(x))
    assert y.shape == (B, C_OUT, H, W)

    # undo_norm: (x * std + mean) * 2 - 1
    un = jax.block_until_ready(model.undo_norm(x))
    ref_un = (x * input_std.reshape(1, C, 1, 1)
              + input_mean.reshape(1, C, 1, 1)) * 2.0 - 1.0
    assert jnp.allclose(un, ref_un, atol=1e-5), "undo_norm mismatch"

    # sample_statistics (Gaussian): mean over S, unbiased variance over S
    s1, s2 = model.sample_statistics(samples)
    s1, s2 = jax.block_until_ready(s1), jax.block_until_ready(s2)
    ref_s1 = samples.mean(axis=1)
    ref_s2 = ((samples - samples.mean(axis=1, keepdims=True)) ** 2).sum(axis=1) / (S - 1)
    assert jnp.allclose(s1, ref_s1, atol=1e-5), "sample_1st mismatch"
    assert jnp.allclose(s2, ref_s2, atol=1e-4), "sample_2nd mismatch"

    # reference check for the generator channel-mix path
    ref_y = jnp.einsum("bchw,cn->bnhw", x, w) + b.reshape(1, 2 * C_OUT, 1, 1)
    assert jnp.allclose(y, ref_y[:, :C_OUT], atol=1e-4), "net_g mismatch"

    print("KERNEL_OK")
</pallas_src>

<mosaic_0001>
module attributes {stable_mosaic.version = 11 : i64} {
  func.func @_channel_mix_kernel(%arg0: i32, %arg1: i32, %arg2: memref<18xf32, #tpu.memory_space<smem>>, %arg3: memref<6xf32, #tpu.memory_space<smem>>, %arg4: memref<1x3x256xf32, #tpu.memory_space<vmem>>, %arg5: memref<1x6x256xf32, #tpu.memory_space<vmem>>) attributes {dimension_semantics = [#tpu.dimension_semantics<parallel>, #tpu.dimension_semantics<parallel>], iteration_bounds = array<i64: 2, 1>, scalar_prefetch = 0 : i64, scratch_operands = 0 : i64, tpu.core_type = #tpu.core_type<tc>, window_params = [{transform_indices = @transform_0, window_bounds = array<i64: 18>}, {transform_indices = @transform_1, window_bounds = array<i64: 6>}, {transform_indices = @transform_2, window_bounds = array<i64: 1, 3, 256>}, {transform_indices = @transform_3, window_bounds = array<i64: 1, 6, 256>}]} {
    %c0 = arith.constant 0 : index
    %c0_0 = arith.constant 0 : index
    %c0_1 = arith.constant 0 : index
    %0 = vector.load %arg4[%c0, %c0_0, %c0_1] : memref<1x3x256xf32, #tpu.memory_space<vmem>>, vector<1x3x256xf32>
    %1 = vector.extract_strided_slice %0 {offsets = [0, 0, 0], sizes = [1, 1, 256], strides = [1, 1, 1]} : vector<1x3x256xf32> to vector<1x1x256xf32>
    %c0_2 = arith.constant 0 : index
    %2 = memref.load %arg2[%c0_2] : memref<18xf32, #tpu.memory_space<smem>>
    %3 = vector.broadcast %2 : f32 to vector<1x1x256xf32>
    %4 = arith.mulf %1, %3 : vector<1x1x256xf32>
    %c0_3 = arith.constant 0 : index
    %5 = memref.load %arg3[%c0_3] : memref<6xf32, #tpu.memory_space<smem>>
    %6 = vector.broadcast %5 : f32 to vector<1x1x256xf32>
    %7 = arith.addf %4, %6 : vector<1x1x256xf32>
    %8 = vector.extract_strided_slice %0 {offsets = [0, 1, 0], sizes = [1, 1, 256], strides = [1, 1, 1]} : vector<1x3x256xf32> to vector<1x1x256xf32>
    %c6 = arith.constant 6 : index
    %9 = memref.load %arg2[%c6] : memref<18xf32, #tpu.memory_space<smem>>
    %10 = vector.broadcast %9 : f32 to vector<1x1x256xf32>
    %11 = arith.mulf %8, %10 : vector<1x1x256xf32>
    %12 = arith.addf %7, %11 : vector<1x1x256xf32>
    %13 = vector.extract_strided_slice %0 {offsets = [0, 2, 0], sizes = [1, 1, 256], strides = [1, 1, 1]} : vector<1x3x256xf32> to vector<1x1x256xf32>
    %c12 = arith.constant 12 : index
    %14 = memref.load %arg2[%c12] : memref<18xf32, #tpu.memory_space<smem>>
    %15 = vector.broadcast %14 : f32 to vector<1x1x256xf32>
    %16 = arith.mulf %13, %15 : vector<1x1x256xf32>
    %17 = arith.addf %12, %16 : vector<1x1x256xf32>
    %18 = vector.extract_strided_slice %0 {offsets = [0, 0, 0], sizes = [1, 1, 256], strides = [1, 1, 1]} : vector<1x3x256xf32> to vector<1x1x256xf32>
    %c1 = arith.constant 1 : index
    %19 = memref.load %arg2[%c1] : memref<18xf32, #tpu.memory_space<smem>>
    %20 = vector.broadcast %19 : f32 to vector<1x1x256xf32>
    %21 = arith.mulf %18, %20 : vector<1x1x256xf32>
    %c1_4 = arith.constant 1 : index
    %22 = memref.load %arg3[%c1_4] : memref<6xf32, #tpu.memory_space<smem>>
    %23 = vector.broadcast %22 : f32 to vector<1x1x256xf32>
    %24 = arith.addf %21, %23 : vector<1x1x256xf32>
    %25 = vector.extract_strided_slice %0 {offsets = [0, 1, 0], sizes = [1, 1, 256], strides = [1, 1, 1]} : vector<1x3x256xf32> to vector<1x1x256xf32>
    %c7 = arith.constant 7 : index
    %26 = memref.load %arg2[%c7] : memref<18xf32, #tpu.memory_space<smem>>
    %27 = vector.broadcast %26 : f32 to vector<1x1x256xf32>
    %28 = arith.mulf %25, %27 : vector<1x1x256xf32>
    %29 = arith.addf %24, %28 : vector<1x1x256xf32>
    %30 = vector.extract_strided_slice %0 {offsets = [0, 2, 0], sizes = [1, 1, 256], strides = [1, 1, 1]} : vector<1x3x256xf32> to vector<1x1x256xf32>
    %c13 = arith.constant 13 : index
    %31 = memref.load %arg2[%c13] : memref<18xf32, #tpu.memory_space<smem>>
    %32 = vector.broadcast %31 : f32 to vector<1x1x256xf32>
    %33 = arith.mulf %30, %32 : vector<1x1x256xf32>
    %34 = arith.addf %29, %33 : vector<1x1x256xf32>
    %35 = vector.extract_strided_slice %0 {offsets = [0, 0, 0], sizes = [1, 1, 256], strides = [1, 1, 1]} : vector<1x3x256xf32> to vector<1x1x256xf32>
    %c2 = arith.constant 2 : index
    %36 = memref.load %arg2[%c2] : memref<18xf32, #tpu.memory_space<smem>>
    %37 = vector.broadcast %36 : f32 to vector<1x1x256xf32>
    %38 = arith.mulf %35, %37 : vector<1x1x256xf32>
    %c2_5 = arith.constant 2 : index
    %39 = memref.load %arg3[%c2_5] : memref<6xf32, #tpu.memory_space<smem>>
    %40 = vector.broadcast %39 : f32 to vector<1x1x256xf32>
    %41 = arith.addf %38, %40 : vector<1x1x256xf32>
    %42 = vector.extract_strided_slice %0 {offsets = [0, 1, 0], sizes = [1, 1, 256], strides = [1, 1, 1]} : vector<1x3x256xf32> to vector<1x1x256xf32>
    %c8 = arith.constant 8 : index
    %43 = memref.load %arg2[%c8] : memref<18xf32, #tpu.memory_space<smem>>
    %44 = vector.broadcast %43 : f32 to vector<1x1x256xf32>
    %45 = arith.mulf %42, %44 : vector<1x1x256xf32>
    %46 = arith.addf %41, %45 : vector<1x1x256xf32>
    %47 = vector.extract_strided_slice %0 {offsets = [0, 2, 0], sizes = [1, 1, 256], strides = [1, 1, 1]} : vector<1x3x256xf32> to vector<1x1x256xf32>
    %c14 = arith.constant 14 : index
    %48 = memref.load %arg2[%c14] : memref<18xf32, #tpu.memory_space<smem>>
    %49 = vector.broadcast %48 : f32 to vector<1x1x256xf32>
    %50 = arith.mulf %47, %49 : vector<1x1x256xf32>
    %51 = arith.addf %46, %50 : vector<1x1x256xf32>
    %52 = vector.extract_strided_slice %0 {offsets = [0, 0, 0], sizes = [1, 1, 256], strides = [1, 1, 1]} : vector<1x3x256xf32> to vector<1x1x256xf32>
    %c3 = arith.constant 3 : index
    %53 = memref.load %arg2[%c3] : memref<18xf32, #tpu.memory_space<smem>>
    %54 = vector.broadcast %53 : f32 to vector<1x1x256xf32>
    %55 = arith.mulf %52, %54 : vector<1x1x256xf32>
    %c3_6 = arith.constant 3 : index
    %56 = memref.load %arg3[%c3_6] : memref<6xf32, #tpu.memory_space<smem>>
    %57 = vector.broadcast %56 : f32 to vector<1x1x256xf32>
    %58 = arith.addf %55, %57 : vector<1x1x256xf32>
    %59 = vector.extract_strided_slice %0 {offsets = [0, 1, 0], sizes = [1, 1, 256], strides = [1, 1, 1]} : vector<1x3x256xf32> to vector<1x1x256xf32>
    %c9 = arith.constant 9 : index
    %60 = memref.load %arg2[%c9] : memref<18xf32, #tpu.memory_space<smem>>
    %61 = vector.broadcast %60 : f32 to vector<1x1x256xf32>
    %62 = arith.mulf %59, %61 : vector<1x1x256xf32>
    %63 = arith.addf %58, %62 : vector<1x1x256xf32>
    %64 = vector.extract_strided_slice %0 {offsets = [0, 2, 0], sizes = [1, 1, 256], strides = [1, 1, 1]} : vector<1x3x256xf32> to vector<1x1x256xf32>
    %c15 = arith.constant 15 : index
    %65 = memref.load %arg2[%c15] : memref<18xf32, #tpu.memory_space<smem>>
    %66 = vector.broadcast %65 : f32 to vector<1x1x256xf32>
    %67 = arith.mulf %64, %66 : vector<1x1x256xf32>
    %68 = arith.addf %63, %67 : vector<1x1x256xf32>
    %69 = vector.extract_strided_slice %0 {offsets = [0, 0, 0], sizes = [1, 1, 256], strides = [1, 1, 1]} : vector<1x3x256xf32> to vector<1x1x256xf32>
    %c4 = arith.constant 4 : index
    %70 = memref.load %arg2[%c4] : memref<18xf32, #tpu.memory_space<smem>>
    %71 = vector.broadcast %70 : f32 to vector<1x1x256xf32>
    %72 = arith.mulf %69, %71 : vector<1x1x256xf32>
    %c4_7 = arith.constant 4 : index
    %73 = memref.load %arg3[%c4_7] : memref<6xf32, #tpu.memory_space<smem>>
    %74 = vector.broadcast %73 : f32 to vector<1x1x256xf32>
    %75 = arith.addf %72, %74 : vector<1x1x256xf32>
    %76 = vector.extract_strided_slice %0 {offsets = [0, 1, 0], sizes = [1, 1, 256], strides = [1, 1, 1]} : vector<1x3x256xf32> to vector<1x1x256xf32>
    %c10 = arith.constant 10 : index
    %77 = memref.load %arg2[%c10] : memref<18xf32, #tpu.memory_space<smem>>
    %78 = vector.broadcast %77 : f32 to vector<1x1x256xf32>
    %79 = arith.mulf %76, %78 : vector<1x1x256xf32>
    %80 = arith.addf %75, %79 : vector<1x1x256xf32>
    %81 = vector.extract_strided_slice %0 {offsets = [0, 2, 0], sizes = [1, 1, 256], strides = [1, 1, 1]} : vector<1x3x256xf32> to vector<1x1x256xf32>
    %c16 = arith.constant 16 : index
    %82 = memref.load %arg2[%c16] : memref<18xf32, #tpu.memory_space<smem>>
    %83 = vector.broadcast %82 : f32 to vector<1x1x256xf32>
    %84 = arith.mulf %81, %83 : vector<1x1x256xf32>
    %85 = arith.addf %80, %84 : vector<1x1x256xf32>
    %86 = vector.extract_strided_slice %0 {offsets = [0, 0, 0], sizes = [1, 1, 256], strides = [1, 1, 1]} : vector<1x3x256xf32> to vector<1x1x256xf32>
    %c5 = arith.constant 5 : index
    %87 = memref.load %arg2[%c5] : memref<18xf32, #tpu.memory_space<smem>>
    %88 = vector.broadcast %87 : f32 to vector<1x1x256xf32>
    %89 = arith.mulf %86, %88 : vector<1x1x256xf32>
    %c5_8 = arith.constant 5 : index
    %90 = memref.load %arg3[%c5_8] : memref<6xf32, #tpu.memory_space<smem>>
    %91 = vector.broadcast %90 : f32 to vector<1x1x256xf32>
    %92 = arith.addf %89, %91 : vector<1x1x256xf32>
    %93 = vector.extract_strided_slice %0 {offsets = [0, 1, 0], sizes = [1, 1, 256], strides = [1, 1, 1]} : vector<1x3x256xf32> to vector<1x1x256xf32>
    %c11 = arith.constant 11 : index
    %94 = memref.load %arg2[%c11] : memref<18xf32, #tpu.memory_space<smem>>
    %95 = vector.broadcast %94 : f32 to vector<1x1x256xf32>
    %96 = arith.mulf %93, %95 : vector<1x1x256xf32>
    %97 = arith.addf %92, %96 : vector<1x1x256xf32>
    %98 = vector.extract_strided_slice %0 {offsets = [0, 2, 0], sizes = [1, 1, 256], strides = [1, 1, 1]} : vector<1x3x256xf32> to vector<1x1x256xf32>
    %c17 = arith.constant 17 : index
    %99 = memref.load %arg2[%c17] : memref<18xf32, #tpu.memory_space<smem>>
    %100 = vector.broadcast %99 : f32 to vector<1x1x256xf32>
    %101 = arith.mulf %98, %100 : vector<1x1x256xf32>
    %102 = arith.addf %97, %101 : vector<1x1x256xf32>
    %103 = tpu.concatenate %17, %34, %51, %68, %85, %102 in 1 : vector<1x1x256xf32>, vector<1x1x256xf32>, vector<1x1x256xf32>, vector<1x1x256xf32>, vector<1x1x256xf32>, vector<1x1x256xf32> -> vector<1x6x256xf32>
    %c0_9 = arith.constant 0 : index
    %c0_10 = arith.constant 0 : index
    %c0_11 = arith.constant 0 : index
    %104 = vector.load %arg5[%c0_9, %c0_10, %c0_11] : memref<1x6x256xf32, #tpu.memory_space<vmem>>, vector<1x6x256xf32>
    tpu.vector_store %arg5[%c0_9, %c0_10, %c0_11], %103 {strides = array<i32>} : memref<1x6x256xf32, #tpu.memory_space<vmem>>, vector<1x6x256xf32>,
    return
  }
  func.func @transform_0(%arg0: i32, %arg1: i32) -> i32 {
    %c0_i32 = arith.constant 0 : i32
    %c0_i32_0 = arith.constant 0 : i32
    return %c0_i32 : i32
  }
  func.func @transform_1(%arg0: i32, %arg1: i32) -> i32 {
    %c0_i32 = arith.constant 0 : i32
    %c0_i32_0 = arith.constant 0 : i32
    return %c0_i32 : i32
  }
  func.func @transform_2(%arg0: i32, %arg1: i32) -> (i32, i32, i32) {
    %c0_i32 = arith.constant 0 : i32
    %c0_i32_0 = arith.constant 0 : i32
    return %arg0, %c0_i32, %arg1 : i32, i32, i32
  }
  func.func @transform_3(%arg0: i32, %arg1: i32) -> (i32, i32, i32) {
    %c0_i32 = arith.constant 0 : i32
    %c0_i32_0 = arith.constant 0 : i32
    return %arg0, %c0_i32, %arg1 : i32, i32, i32
  }
}

</mosaic_0001>

<bundles_post_ra>
// kernel: tpu_custom_call.1
= control target key start
LH: loop header
LB: loop body
LE: loop exit
PB: predicated region body
PF: predicated region fallthrough
CT: control target
= control target key end

     0   :  { %8 = vsyncpa [#allocation3], 0  ;;  %s815_s0 = inlined_call_operand.vmem [shape: f32[18], index: 0, kind: input, shape index: {}]   ;;  %s816_s1 = inlined_call_operand.vmem [shape: f32[6], index: 1, kind: input, shape index: {}]   ;;  %s817_s2 = inlined_call_operand.vmem [shape: f32[2,3,256], index: 2, kind: input, shape index: {}]   ;;  %s818_s3 = inlined_call_operand.vmem [shape: f32[2,6,256], index: 3, kind: output, shape index: {}]  }
   0x1   :  { %9 = vsyncpa [#allocation5], 0  ;;  %s706_s12 = smov 0   ;;  %s708_s13 = smov 0  }
   0x2   :  { %s710_s14 = smov 0  }
   0x3 LB: > { %s526_s15 = sadd.s32 4294967295, %s682_s14   ;;  %s27_s16 = sadd.s32 1, %s678_s13  ;;  %s682_s14 = sphi %s710_s14, %s15_s14   ;;  %s678_s13 = sphi %s708_s13, %s821_s13   ;;  %s674_s12 = sphi %s706_s12, %s820_s12  }
   0x4   : > { %p29_p0 = scmp.ge.s32.totalorder %s27_s16, 2  ;;  %p528_p1 = scmp.ge.s32.totalorder %s682_s14, 1 }
   0x5   : > { %p130_p2 = scmp.lt.s32.totalorder %s682_s14, 3  ;;  %p727_p4 = scmp.eq.s32.totalorder %s526_s15, 0 }
   0x6   : > { %s823_s16 = smov (%p29_p0, %s27_s16), 0  ;;  %s142_s20 = sshll.u32 %s815_s0, 4  ;;  %s143_s20 = int_to_ptr.vmem [resolvable:$true] %s142_s20 }
   0x7   : > { %p131_p3 = pnand %p528_p1, %p130_p2  ;;  %s152_s23 = sshll.u32 %s816_s1, 4  ;;  %s153_s23 = int_to_ptr.vmem [resolvable:$true] %s152_s23 }
   0x8   : > { %s684_s24 = smov [#allocation2]   ;;  %s685_s25 = smov [#allocation4]  }
   0x9   : > { %p585_p5 = pneg %p131_p3 }
   0xa   : > { %178 = sbr.rel (%p131_p3) target bundleno = 62 (0x3e), region = 32 }
   0xb   : > { %p586_p6 = pnand %p727_p4, %p585_p5 }
   0xd   : > { %588 = dma.vmem_to_smem (!%p586_p6), %s143_s20, 16, %s684_s24, [#allocation3]  }
   0xe   : > { %591 = dma.vmem_to_smem (!%p586_p6), %s153_s23, 16, %s685_s25, [#allocation5]  }
   0xf   : > { %665 = dma.done.wait (%p727_p4), [#allocation3], 16  }
  0x10   : > { %667 = vsyncadd (%p727_p4), [#allocation3], 4294967280 }
  0x11   : > { %669 = dma.done.wait (%p727_p4), [#allocation5], 16  }
  0x12   : > { %671 = vsyncadd (%p727_p4), [#allocation5], 4294967280 }
  0x13   : > { %190 = sfence }
  0x14   : > { %p218_p7 = scmp.lt.s32.totalorder %s674_s12, 1  ;;  %s238_s26 = sld [smem:[#allocation2]]  ;;  %vm400_vm0 = vcmask 1040384   ;;  %vm403_vm1 = vcmask 1041408   ;;  %vm406_vm2 = vcmask 1042432   ;;  %vm409_vm3 = vcmask 1043456  }
  0x15   : > { %s241_s27 = sld [smem:[#allocation4]]  ;;  %vm412_vm4 = vcmask 1044480  }
  0x16   : > { %s825_s12 = smov (!%p218_p7, %s674_s12), 1  ;;  %s539_s28 = sld [smem:[#allocation2 + $0x6]] }
  0x17   : > { %s575_s29 = sshll.u32 %s825_s12, 3  ;;  %s541_s6 = sld [smem:[#allocation2 + $0xc]] }
  0x18   : > { %s225_s5 = scalar_lea.vmem %s817_s2, %s575_s29  ;;  %s543_s7 = sld [smem:[#allocation2 + $0x1]] }
  0x19   : > { %v755_v0 = vld [vmem:[%s225_s5] sm:$0x77]  ;;  %s544_s8 = sld [smem:[#allocation4 + $0x1]]  ;;  %s576_s4 = sshll.u32 %s825_s12, 4 }
  0x1a   : > { %v239_v1 = vstv %s238_s26  ;;  %s545_s9 = sld [smem:[#allocation2 + $0x7]] }
  0x1b   : > { %v240_v2 = vmul.f32 %v239_v1, %v755_v0  ;;  %v242_v3 = vstv %s241_s27  ;;  %s547_s10 = sld [smem:[#allocation2 + $0xd]] }
  0x1c   : > { %v245_v4 = vstv %s539_s28  ;;  %s549_s11 = sld [smem:[#allocation2 + $0x2]] }
  0x1d   : > { %v246_v5 = vmul.f32 %v245_v4, %v755_v0  ;;  %v243_v6 = vadd.f32 %v242_v3, %v240_v2  ;;  %v253_v8 = vstv %s541_s6  ;;  %s550_s15 = sld [smem:[#allocation4 + $0x2]] }
  0x1e   : > { %v254_v9 = vmul.f32 %v253_v8, %v755_v0  ;;  %v261_v10 = vstv %s543_s7  ;;  %s551_s17 = sld [smem:[#allocation2 + $0x8]]  ;;  %s235_s7 = scalar_lea.vmem %s818_s3, %s576_s4 }
  0x1f   : > { %v540_v7 = vrot.slane %v246_v5, 9  ;;  %v262_v11 = vmul.f32 %v261_v10, %v755_v0  ;;  %v264_v12 = vstv %s544_s8  ;;  %s553_s18 = sld [smem:[#allocation2 + $0xe]] }
  0x20   : > { %v542_v14 = vrot.slane %v254_v9, 10  ;;  %v267_v15 = vstv %s545_s9  ;;  %s555_s19 = sld [smem:[#allocation2 + $0x3]] }
  0x21   : > { %v251_v13 = vadd.f32 %v540_v7, %v243_v6  ;;  %v265_v16 = vadd.f32 %v264_v12, %v262_v11  ;;  %v268_v17 = vmul.f32 %v267_v15, %v755_v0  ;;  %v275_v18 = vstv %s547_s10  ;;  %s762_s20 = sld [smem:[#allocation4 + $0x3]] }
  0x22   : > { %v276_v19 = vmul.f32 %v275_v18, %v755_v0  ;;  %v283_v20 = vstv %s549_s11  ;;  %s765_s21 = sld [smem:[#allocation2 + $0x9]] }
  0x23   : > { %v546_v21 = vrot.slane %v268_v17, 9  ;;  %v284_v22 = vmul.f32 %v283_v20, %v755_v0  ;;  %v286_v23 = vstv %s550_s15  ;;  %s559_s22 = sld [smem:[#allocation2 + $0xf]]  ;;  %v259_v24 = vadd.f32 %v542_v14, %v251_v13 }
  0x24   : > { %v548_v25 = vrot.slane %v276_v19, 10  ;;  %v289_v26 = vstv %s551_s17  ;;  %s768_s23 = sld [smem:[#allocation2 + $0x4]] }
  0x25   : > { %v273_v27 = vadd.f32 %v546_v21, %v265_v16  ;;  %v287_v28 = vadd.f32 %v286_v23, %v284_v22  ;;  %v290_v29 = vmul.f32 %v289_v26, %v755_v0  ;;  %v297_v30 = vstv %s553_s18  ;;  %s771_s24 = sld [smem:[#allocation4 + $0x4]] }
  0x26   : > { %v298_v31 = vmul.f32 %v297_v30, %v755_v0  ;;  %v305_v32 = vstv %s555_s19  ;;  %s774_s25 = sld [smem:[#allocation2 + $0xa]]  ;;  %v371_v39 = vperm.slane %v259_v24, 0  ;;  %v372_v40 = vperm.slane %v259_v24, 4 }
  0x27   : > { %v281_v33 = vadd.f32 %v548_v25, %v273_v27  ;;  %v552_v34 = vrot.slane %v290_v29, 9  ;;  %v306_v35 = vmul.f32 %v305_v32, %v755_v0  ;;  %v308_v36 = vstv %s762_s20  ;;  %s565_s26 = sld [smem:[#allocation2 + $0x10]] }
  0x28   : > { %v554_v37 = vrot.slane %v298_v31, 10  ;;  %v311_v38 = vstv %s765_s21  ;;  %s779_s27 = sld [smem:[#allocation2 + $0x5]] }
  0x29   : > { %v295_v41 = vadd.f32 %v552_v34, %v287_v28  ;;  %v309_v42 = vadd.f32 %v308_v36, %v306_v35  ;;  %v312_v43 = vmul.f32 %v311_v38, %v755_v0  ;;  %v319_v44 = vstv %s559_s22  ;;  %s782_s28 = sld [smem:[#allocation4 + $0x5]] }
  0x2a   : > { %v320_v45 = vmul.f32 %v319_v44, %v755_v0  ;;  %v327_v46 = vstv %s768_s23  ;;  %s569_s29 = sld [smem:[#allocation2 + $0xb]]  ;;  %v376_v47 = vperm.slane %v281_v33, 0  ;;  %v377_v48 = vperm.slane %v281_v33, 4 }
  0x2b   : > { %v303_v49 = vadd.f32 %v554_v37, %v295_v41  ;;  %v558_v50 = vrot.slane %v312_v43, 9  ;;  %v328_v51 = vmul.f32 %v327_v46, %v755_v0  ;;  %v330_v52 = vstv %s771_s24  ;;  %s571_s30 = sld [smem:[#allocation2 + $0x11]] }
  0x2c   : > { %v560_v53 = vrot.slane %v320_v45, 10  ;;  %v333_v54 = vstv %s774_s25  ;;  %v401_v55 = vsel %vm400_vm0, %v371_v39, %v376_v47  ;;  %v402_v56 = vsel %vm400_vm0, %v372_v40, %v377_v48 }
  0x2d   : > { %v317_v57 = vadd.f32 %v558_v50, %v309_v42  ;;  %v331_v58 = vadd.f32 %v330_v52, %v328_v51  ;;  %v334_v59 = vmul.f32 %v333_v54, %v755_v0  ;;  %v341_v60 = vstv %s565_s26 }
  0x2e   : > { %v342_v61 = vmul.f32 %v341_v60, %v755_v0  ;;  %v349_v62 = vstv %s779_s27  ;;  %v381_v63 = vperm.slane %v303_v49, 0  ;;  %v382_v1 = vperm.slane %v303_v49, 4 }
  0x2f   : > { %v325_v2 = vadd.f32 %v560_v53, %v317_v57  ;;  %v564_v3 = vrot.slane %v334_v59, 9  ;;  %v350_v4 = vmul.f32 %v349_v62, %v755_v0  ;;  %v352_v5 = vstv %s782_s28 }
  0x30   : > { %v566_v6 = vrot.slane %v342_v61, 10  ;;  %v355_v7 = vstv %s569_s29  ;;  %v404_v8 = vsel %vm403_vm1, %v401_v55, %v381_v63  ;;  %v405_v16 = vsel %vm403_vm1, %v402_v56, %v382_v1 }
  0x31   : > { %v339_v9 = vadd.f32 %v564_v3, %v331_v58  ;;  %v353_v10 = vadd.f32 %v352_v5, %v350_v4  ;;  %v356_v11 = vmul.f32 %v355_v7, %v755_v0  ;;  %v363_v12 = vstv %s571_s30 }
  0x32   : > { %v364_v13 = vmul.f32 %v363_v12, %v755_v0  ;;  %v386_v14 = vperm.slane %v325_v2, 0  ;;  %v387_v15 = vperm.slane %v325_v2, 4 }
  0x33   : > { %v347_v17 = vadd.f32 %v566_v6, %v339_v9  ;;  %v570_v18 = vrot.slane %v356_v11, 9 }
  0x34   : > { %v572_v19 = vrot.slane %v364_v13, 10  ;;  %v407_v20 = vsel %vm406_vm2, %v404_v8, %v386_v14  ;;  %v408_v24 = vsel %vm406_vm2, %v405_v16, %v387_v15 }
  0x35   : > { %v361_v21 = vadd.f32 %v570_v18, %v353_v10  ;;  %v391_v22 = vperm.slane %v347_v17, 0  ;;  %v392_v23 = vperm.slane %v347_v17, 4 }
  0x37   : > { %v369_v25 = vadd.f32 %v572_v19, %v361_v21  ;;  %v410_v26 = vsel %vm409_vm3, %v407_v20, %v391_v22  ;;  %v411_v27 = vsel %vm409_vm3, %v408_v24, %v392_v23 }
  0x39   : > { %v396_v0 = vperm.slane %v369_v25, 0  ;;  %v397_v28 = vperm.slane %v369_v25, 4 }
  0x3b   : > { %v413_v29 = vsel %vm412_vm4, %v410_v26, %v396_v0  ;;  %v414_v30 = vsel %vm412_vm4, %v411_v27, %v397_v28 }
  0x3c   : > { %415 = vst [vmem:[%s235_s7] sm:$0x3f] %v413_v29 }
  0x3d   : > { %416 = vst [vmem:[%s235_s7 + $0x8] sm:$0x3f] %v414_v30 }
  0x3e PF: > { %s15_s14 = sadd.s32 1, %s682_s14   ;;  %s820_s12 = smov %s678_s13 }
  0x3f   : > { %p12_p8 = scmp.ge.s32.totalorder %s15_s14, 4   ;;  %s821_s13 = smov %s823_s16 }
  0x41   :  { %14 = sbr.rel (!%p12_p8) target bundleno = 3 (0x3), region = 71 }
  0x46   :  { %447 = vsyncpa [#allocation3], 1 }
  0x47   :  { %449 = vsyncpa [#allocation3 + $0x1], 1 }
  0x48   :  { %450 = vsyncpa [#allocation5], 1 }

</bundles_post_ra>
